<compile_context>
chip_gen: v6e
topology: v6e:2x2x1
jax: 0.10.0
libtpu: 0.0.40
codegen_flags: <defaults>
</compile_context>

<pallas_src>
import jax
import jax.numpy as jnp
import numpy as np
from jax.experimental import pallas as pl
from jax.experimental.pallas import tpu as pltpu


def gl_kernel(y_ref, emb_ref, stat_ref):
    # Single VMEM-resident tile: load once, store to both outputs.
    y = y_ref[...]
    emb_ref[...] = y
    stat_ref[...] = y


def _pick_block_rows(B, row_bytes, sublane_align, vmem_budget_bytes=8 << 20):
    """Pick how many leading (batch) rows each block covers.

    Largest divisor of B such that 1 input block + 2 output blocks,
    double-buffered (6x block bytes), stay under a conservative VMEM budget.
    Prefers choices that leave >= 2 grid steps (megacore split on v7x).
    `sublane_align`: when Y is 2-D the batch axis is the sublane axis, so the
    block row-count must be a multiple of 8 or equal to the full extent.
    """
    def ok(d):
        if B % d:
            return False
        if 6 * d * row_bytes > vmem_budget_bytes:
            return False
        if sublane_align and d % 8 and d != B:
            return False
        return True

    preferred = [d for d in range(1, B + 1) if ok(d) and B // d >= 2]
    if preferred:
        return max(preferred)
    fallback = [d for d in range(1, B + 1) if ok(d)]
    # Final fallback: full-array block (always layout-legal).
    return max(fallback) if fallback else B


def gl_forward(Y):
    """embeddings_conv, stat_conv = Y, Y  (identity forward of GL)."""
    assert Y.ndim >= 2, "expected Y with a leading batch axis"
    B = Y.shape[0]
    rest = Y.shape[1:]
    nrest = len(rest)

    row_bytes = int(np.prod(rest)) * jnp.dtype(Y.dtype).itemsize
    block_b = _pick_block_rows(B, row_bytes, sublane_align=(Y.ndim == 2))
    grid_b = B // block_b

    # Full trailing dims per block => satisfies the (8,128) rule trivially and
    # keeps every load/store lane-dense and unmasked.
    block = (block_b,) + rest
    spec = pl.BlockSpec(block, lambda b: (b,) + (0,) * nrest)

    emb, stat = pl.pallas_call(
        gl_kernel,
        grid=(grid_b,),
        in_specs=[spec],
        out_specs=[spec, spec],
        out_shape=(
            jax.ShapeDtypeStruct(Y.shape, Y.dtype),
            jax.ShapeDtypeStruct(Y.shape, Y.dtype),
        ),
        compiler_params=pltpu.CompilerParams(
            dimension_semantics=("parallel",)),
    )(Y)
    return emb, stat


if __name__ == "__main__":
    key = jax.random.PRNGKey(0)
    # Small shapes consistent with how GL is fed in summary_nets usage:
    # Y of shape (batch, n_series, series_len).
    B, N, L = 2, 8, 801
    Y = jax.random.normal(key, (B, N, L), jnp.float32)

    emb, stat = gl_forward(Y)
    jax.block_until_ready((emb, stat))

    # Reference: GL.forward is the identity on both outputs.
    assert emb.shape == Y.shape and stat.shape == Y.shape
    np.testing.assert_array_equal(np.asarray(emb), np.asarray(Y))
    np.testing.assert_array_equal(np.asarray(stat), np.asarray(Y))
    print("KERNEL_OK")
</pallas_src>

<mosaic_0001>
module attributes {stable_mosaic.version = 11 : i64} {
  func.func @gl_kernel(%arg0: i32, %arg1: memref<1x8x801xf32, #tpu.memory_space<vmem>>, %arg2: memref<1x8x801xf32, #tpu.memory_space<vmem>>, %arg3: memref<1x8x801xf32, #tpu.memory_space<vmem>>) attributes {dimension_semantics = [#tpu.dimension_semantics<parallel>], iteration_bounds = array<i64: 2>, scalar_prefetch = 0 : i64, scratch_operands = 0 : i64, tpu.core_type = #tpu.core_type<tc>, window_params = [{transform_indices = @transform_0, window_bounds = array<i64: 1, 8, 801>}, {transform_indices = @transform_1, window_bounds = array<i64: 1, 8, 801>}, {transform_indices = @transform_2, window_bounds = array<i64: 1, 8, 801>}]} {
    %c0 = arith.constant 0 : index
    %c0_0 = arith.constant 0 : index
    %c0_1 = arith.constant 0 : index
    %0 = vector.load %arg1[%c0, %c0_0, %c0_1] : memref<1x8x801xf32, #tpu.memory_space<vmem>>, vector<1x8x801xf32>
    %c0_2 = arith.constant 0 : index
    %c0_3 = arith.constant 0 : index
    %c0_4 = arith.constant 0 : index
    %1 = vector.load %arg2[%c0_2, %c0_3, %c0_4] : memref<1x8x801xf32, #tpu.memory_space<vmem>>, vector<1x8x801xf32>
    tpu.vector_store %arg2[%c0_2, %c0_3, %c0_4], %0 {strides = array<i32>} : memref<1x8x801xf32, #tpu.memory_space<vmem>>, vector<1x8x801xf32>,
    %c0_5 = arith.constant 0 : index
    %c0_6 = arith.constant 0 : index
    %c0_7 = arith.constant 0 : index
    %2 = vector.load %arg3[%c0_5, %c0_6, %c0_7] : memref<1x8x801xf32, #tpu.memory_space<vmem>>, vector<1x8x801xf32>
    tpu.vector_store %arg3[%c0_5, %c0_6, %c0_7], %0 {strides = array<i32>} : memref<1x8x801xf32, #tpu.memory_space<vmem>>, vector<1x8x801xf32>,
    return
  }
  func.func @transform_0(%arg0: i32) -> (i32, i32, i32) {
    %c0_i32 = arith.constant 0 : i32
    %c0_i32_0 = arith.constant 0 : i32
    %c0_i32_1 = arith.constant 0 : i32
    return %arg0, %c0_i32, %c0_i32_0 : i32, i32, i32
  }
  func.func @transform_1(%arg0: i32) -> (i32, i32, i32) {
    %c0_i32 = arith.constant 0 : i32
    %c0_i32_0 = arith.constant 0 : i32
    %c0_i32_1 = arith.constant 0 : i32
    return %arg0, %c0_i32, %c0_i32_0 : i32, i32, i32
  }
  func.func @transform_2(%arg0: i32) -> (i32, i32, i32) {
    %c0_i32 = arith.constant 0 : i32
    %c0_i32_0 = arith.constant 0 : i32
    %c0_i32_1 = arith.constant 0 : i32
    return %arg0, %c0_i32, %c0_i32_0 : i32, i32, i32
  }
}

</mosaic_0001>

<bundles_post_ra>
// kernel: tpu_custom_call.1
= control target key start
LH: loop header
LB: loop body
LE: loop exit
PB: predicated region body
PF: predicated region fallthrough
CT: control target
= control target key end

     0   :  { %8 = vsyncpa [#allocation3], 0  ;;  %s707_s0 = inlined_call_operand.hbm [shape: f32[2,8,801], index: 0, kind: input, shape index: {}]   ;;  %s708_s1 = inlined_call_operand.hbm [shape: f32[2,8,801], index: 1, kind: output, shape index: {0}]   ;;  %s709_s2 = inlined_call_operand.hbm [shape: f32[2,8,801], index: 2, kind: output, shape index: {1}]  }
   0x1   :  { %10 = vsyncpa [#allocation3 + $0x1], 0 }
   0x2   :  { %11 = vsyncpa [#allocation4], 0 }
   0x3   :  { %13 = vsyncpa [#allocation4 + $0x1], 0 }
   0x4   :  { %14 = vsyncpa [#allocation7], 0 }
   0x5   :  { %16 = vsyncpa [#allocation7 + $0x1], 0  ;;  %s536_s9 = smov 0   ;;  %s538_s10 = smov 0  }
   0x6   :  { %s540_s11 = smov 0   ;;  %s542_s12 = smov 0  }
   0x7 LB: > { %s557_s13 = sadd.s32 4294967295, %s516_s12   ;;  %s329_s14 = sadd.s32 4294967294, %s516_s12   ;;  %s516_s12 = sphi %s542_s12, %s725_s12   ;;  %s512_s11 = sphi %s540_s11, %s724_s11   ;;  %s508_s10 = sphi %s538_s10, %s723_s10   ;;  %s504_s9 = sphi %s536_s9, %s722_s9  }
   0x8   : > { %s561_s15 = sadd.s32 1, %s516_s12   ;;  %s29_s16 = sadd.s32 1, %s512_s11 }
   0x9   : > { %s26_s17 = ssub.s32 %s516_s12, %s561_s15  ;;  %p36_p0 = scmp.ne.s32.totalorder %s512_s11, %s508_s10 }
   0xa   : > { %p27_p1 = scmp.eq.s32.totalorder %s26_s17, 0  ;;  %p37_p2 = scmp.eq.s32.totalorder %s516_s12, 0 }
   0xb   : > { %p42_p3 = scmp.ne.s32.totalorder %s508_s10, %s504_s9  ;;  %p43_p4 = scmp.eq.s32.totalorder %s557_s13, 0 }
   0xc   : > { %s573_s18 = scalar_select %p27_p1, %s512_s11, %s29_s16  }
   0xd   : > { %p38_p5 = por %p37_p2, %p36_p0  ;;  %p575_p6 = por %p43_p4, %p42_p3 }
   0xe   : > { %p66_p7 = scmp.eq.s32.totalorder %s557_s13, 1  ;;  %p72_p8 = scmp.eq.s32.totalorder %s329_s14, 1 }
   0xf   : > { %s712_s19 = scalar_select %p575_p6, 1, 0 }
  0x10   : > { %p360_p10 = scmp.lt.s32.totalorder %s516_s12, 2  ;;  %p582_p11 = por %p66_p7, %p36_p0 }
  0x11   : > { %p586_p12 = por %p72_p8, %p42_p3  ;;  %s118_s22 = sand.u32 1, %s512_s11  }
  0x12   : > { %s713_s20 = scalar_select %p582_p11, 1, 0 }
  0x13   : > { %s714_s21 = scalar_select %p586_p12, 1, 0 }
  0x14   : > { %s339_s23 = smul.u32 896, %s516_s12  ;;  %p597_p13 = pnand %p360_p10, %p38_p5 }
  0x15   : > { %s338_s24 = smul.u32 56, %s118_s22  ;;  %s119_s3 = scalar_lea.sflag [#allocation3], %s118_s22 }
  0x16   : > { %s595_s27 = scalar_lea.hbm %s707_s0, %s339_s23  ;;  %p396_p3 = pneg %p597_p13 }
  0x17   : > { %s122_s29 = scalar_lea.vmem [#allocation2], %s338_s24  ;;  %s394_s4 = scalar_lea.hbm %s595_s27, 896 }
  0x18   : > { %s130_s30 = sshll.u32 %s122_s29, 4  ;;  %p395_p2 = scmp.ne.s32.totalorder %s595_s27, %s394_s4  ;;  %s131_s30 = int_to_ptr.vmem [resolvable:$true] %s130_s30 }
  0x19   : > { %s399_s7 = scalar_lea.hbm %s707_s0, 1792  ;;  %p400_p5 = scmp.lt.s32.totalorder %s595_s27, %s707_s0 }
  0x1a   : > { %p397_p4 = pnand %p396_p3, %p395_p2  ;;  %p401_p8 = scmp.lt.s32.totalorder %s399_s7, %s394_s4 }
  0x1c   : > { %p398_p7 = pneg %p397_p4  ;;  %p402_p10 = por %p401_p8, %p400_p5 }
  0x1e   : > { %p403_p9 = pnand %p402_p10, %p398_p7 }
  0x20   : > { %406 = shalt.err (!%p403_p9)
}
  0x21   : > { %s407_s16 = scalar_lea.vmem %s131_s30, 896  ;;  %s518_s17 = smov [#allocation2]  }
  0x22   : > { %p408_p0 = scmp.ne.s32.totalorder %s131_s30, %s407_s16  ;;  %s412_s22 = sshll.u32 %s518_s17, 4  ;;  %s413_s22 = int_to_ptr.vmem [resolvable:$false] %s412_s22 }
  0x23   : > { %s414_s23 = scalar_lea.vmem %s413_s22, 1792  ;;  %p415_p2 = scmp.lt.s32.totalorder %s131_s30, %s413_s22 }
  0x24   : > { %p410_p1 = pnand %p408_p0, %p396_p3  ;;  %p416_p4 = scmp.lt.s32.totalorder %s414_s23, %s407_s16 }
  0x26   : > { %p411_p12 = pneg %p410_p1  ;;  %p417_p11 = por %p416_p4, %p415_p2 }
  0x28   : > { %p418_p6 = pnand %p417_p11, %p411_p12 }
  0x2a   : > { %421 = shalt.err (!%p418_p6)
}
  0x2b   : > { %352 = dma.hbm_to_vmem [thread:$0]  (!%p597_p13), %s595_s27, 896, %s131_s30, %s119_s3  }
  0x2c   : > { %p716_p9 = scmp.lt.s32.totalorder %s516_s12, 3  ;;  %p717_p7 = scmp.ge.s32.totalorder %s516_s12, 1 }
  0x2e   : > { %p136_p5 = pnand %p717_p7, %p716_p9 }
  0x2f   : > { %s622_s24 = sand.u32 (!%p136_p5), 1, %s508_s10   ;;  %p718_p6 = scmp.ne.s32.totalorder (!%p136_p5), %s712_s19, 0 }
  0x30   : > { %139 = sbr.rel (%p136_p5) target bundleno = 102 (0x66), region = 24  ;;  %s142_s26 = scalar_lea.sflag (!%p136_p5), [#allocation3], %s622_s24 }
  0x31   : > { %s340_s25 = smul.u32 (!%p136_p5), 56, %s622_s24 }
  0x33   : > { %s145_s29 = scalar_lea.vmem (!%p136_p5), [#allocation2], %s340_s25 }
  0x35   : > { %491 = dma.done.wait (%p718_p6), %s142_s26, 896  }
  0x36   : > { %493 = vsyncadd (%p718_p6), %s142_s26, 4294966400  ;;  %s341_s27 = smul.u32 896, %s557_s13  ;;  %s163_s28 = scalar_lea.vmem [#allocation5], %s340_s25  ;;  %v171_v0 = vld [vmem:[%s145_s29] sm:$0xff]  ;;  %v172_v1 = vld [vmem:[%s145_s29 + $0x8] sm:$0xff]  ;;  %vm184_vm0 = vcmask 269312  }
  0x37   : > { %s213_s30 = sshll.u32 %s163_s28, 4  ;;  %s170_s3 = scalar_lea.vmem [#allocation6], %s340_s25  ;;  %v173_v2 = vld [vmem:[%s145_s29 + $0x10] sm:$0xff]  ;;  %178 = vst [vmem:[%s163_s28] sm:$0xff] %v171_v0  ;;  %179 = vst [vmem:[%s163_s28 + $0x8] sm:$0xff] %v172_v1  ;;  %v174_v3 = vld [vmem:[%s145_s29 + $0x18] sm:$0xff]  ;;  %s636_s30 = int_to_ptr.vmem [resolvable:$true] %s213_s30 }
  0x38   : > { %s227_s4 = sshll.u32 %s170_s3, 4  ;;  %180 = vst [vmem:[%s163_s28 + $0x10] sm:$0xff] %v173_v2  ;;  %v175_v4 = vld [vmem:[%s145_s29 + $0x20] sm:$0xff]  ;;  %v176_v5 = vld [vmem:[%s145_s29 + $0x28] sm:$0xff]  ;;  %186 = vst [vmem:[%s170_s3] sm:$0xff] %v171_v0  ;;  %s634_s5 = scalar_lea.hbm %s708_s1, %s341_s27  ;;  %s643_s4 = int_to_ptr.vmem [resolvable:$true] %s227_s4 }
  0x39   : > { %187 = vst [vmem:[%s170_s3 + $0x8] sm:$0xff] %v172_v1  ;;  %188 = vst [vmem:[%s170_s3 + $0x10] sm:$0xff] %v173_v2  ;;  %v177_v6 = vld [vmem:[%s145_s29 + $0x30] sm:$0xff]  ;;  %s641_s8 = scalar_lea.hbm %s709_s2, %s341_s27  ;;  %s194_s14 = scalar_lea.sflag [#allocation4], %s622_s24 }
  0x3a   : > { %181 = vst [vmem:[%s163_s28 + $0x18] sm:$0xff] %v174_v3  ;;  %182 = vst [vmem:[%s163_s28 + $0x20] sm:$0xff] %v175_v4  ;;  %s422_s16 = scalar_lea.vmem %s636_s30, 896  ;;  %p719_p12 = scmp.ne.s32.totalorder %s713_s20, 0 }
  0x3b   : > { %183 = vst [vmem:[%s163_s28 + $0x28] sm:$0xff] %v176_v5  ;;  %189 = vst [vmem:[%s170_s3 + $0x18] sm:$0xff] %v174_v3  ;;  %p423_p11 = scmp.ne.s32.totalorder %s636_s30, %s422_s16  ;;  %s519_s17 = smov [#allocation5]  }
  0x3c   : > { %190 = vst [vmem:[%s170_s3 + $0x20] sm:$0xff] %v175_v4  ;;  %191 = vst [vmem:[%s170_s3 + $0x28] sm:$0xff] %v176_v5  ;;  %s426_s22 = sshll.u32 %s519_s17, 4  ;;  %s427_s22 = int_to_ptr.vmem [resolvable:$false] %s426_s22 }
  0x3d   : > { %185 = vst.msk [vmem:[%s163_s28 + $0x30] sm:$0xff] %vm184_vm0, %v177_v6  ;;  %192 = vst.msk [vmem:[%s170_s3 + $0x30] sm:$0xff] %vm184_vm0, %v177_v6  ;;  %p424_p13 = pnand %p423_p11, %p719_p12  ;;  %s428_s23 = scalar_lea.vmem %s427_s22, 1792 }
  0x3e   : > { %p429_p1 = scmp.lt.s32.totalorder %s636_s30, %s427_s22  ;;  %p430_p3 = scmp.lt.s32.totalorder %s428_s23, %s422_s16 }
  0x3f   : > { %p425_p0 = pneg %p424_p13 }
  0x40   : > { %p431_p8 = por %p430_p3, %p429_p1 }
  0x42   : > { %p432_p10 = pnand %p431_p8, %p425_p0 }
  0x44   : > { %435 = shalt.err (!%p432_p10)
}
  0x45   : > { %s436_s25 = scalar_lea.hbm %s634_s5, 896  ;;  %s440_s27 = scalar_lea.hbm %s708_s1, 1792 }
  0x46   : > { %p437_p2 = scmp.ne.s32.totalorder %s634_s5, %s436_s25  ;;  %p441_p7 = scmp.lt.s32.totalorder %s634_s5, %s708_s1 }
  0x47   : > { %p442_p5 = scmp.lt.s32.totalorder %s440_s27, %s436_s25 }
  0x48   : > { %p438_p4 = pnand %p437_p2, %p719_p12 }
  0x49   : > { %p443_p6 = por %p442_p5, %p441_p7 }
  0x4a   : > { %p439_p9 = pneg %p438_p4 }
  0x4c   : > { %p444_p11 = pnand %p443_p6, %p439_p9 }
  0x4e   : > { %447 = shalt.err (!%p444_p11)
}
  0x4f   : > { %345 = dma.vmem_to_hbm [thread:$0]  (%p719_p12), %s636_s30, 896, %s634_s5, %s194_s14  }
  0x50   : > { %s199_s19 = scalar_lea.sflag [#allocation7], %s622_s24  ;;  %s448_s13 = scalar_lea.vmem %s643_s4, 896 }
  0x51   : > { %p449_p13 = scmp.ne.s32.totalorder %s643_s4, %s448_s13  ;;  %s520_s6 = smov [#allocation6]  }
  0x52   : > { %s452_s7 = sshll.u32 %s520_s6, 4  ;;  %s453_s7 = int_to_ptr.vmem [resolvable:$false] %s452_s7 }
  0x53   : > { %p450_p0 = pnand %p449_p13, %p719_p12  ;;  %s454_s16 = scalar_lea.vmem %s453_s7, 1792 }
  0x54   : > { %p455_p3 = scmp.lt.s32.totalorder %s643_s4, %s453_s7  ;;  %p456_p8 = scmp.lt.s32.totalorder %s454_s16, %s448_s13 }
  0x55   : > { %p451_p1 = pneg %p450_p0 }
  0x56   : > { %p457_p10 = por %p456_p8, %p455_p3 }
  0x58   : > { %p458_p2 = pnand %p457_p10, %p451_p1 }
  0x5a   : > { %461 = shalt.err (!%p458_p2)
}
  0x5b   : > { %s462_s30 = scalar_lea.hbm %s641_s8, 896  ;;  %s466_s14 = scalar_lea.hbm %s709_s2, 1792 }
  0x5c   : > { %p463_p4 = scmp.ne.s32.totalorder %s641_s8, %s462_s30  ;;  %p467_p5 = scmp.lt.s32.totalorder %s641_s8, %s709_s2 }
  0x5d   : > { %p468_p6 = scmp.lt.s32.totalorder %s466_s14, %s462_s30 }
  0x5e   : > { %p464_p9 = pnand %p463_p4, %p719_p12 }
  0x5f   : > { %p469_p11 = por %p468_p6, %p467_p5 }
  0x60   : > { %p465_p7 = pneg %p464_p9 }
  0x62   : > { %p470_p13 = pnand %p469_p11, %p465_p7 }
  0x64   : > { %473 = shalt.err (!%p470_p13)
}
  0x65   : > { %346 = dma.vmem_to_hbm [thread:$0]  (%p719_p12), %s643_s4, 896, %s641_s8, %s199_s19  }
  0x66 PF: > { %s239_s23 = sand.u32 1, %s504_s9   ;;  %p720_p0 = scmp.ne.s32.totalorder %s714_s21, 0 }
  0x67   : > { %p721_p1 = scmp.ge.s32.totalorder %s516_s12, 2  ;;  %s240_s25 = scalar_lea.sflag [#allocation4], %s239_s23 }
  0x69   : > { %p354_p3 = pnand %p721_p1, %p720_p0 }
  0x6b   : > { %p355_p8 = pneg %p354_p3 }
  0x6d   : > { %495 = dma.done.wait (%p355_p8), %s240_s25, 896  }
  0x6e   : > { %497 = vsyncadd (%p355_p8), %s240_s25, 4294966400  ;;  %s249_s26 = scalar_lea.sflag [#allocation7], %s239_s23 }
  0x6f   : > { %499 = dma.done.wait (%p355_p8), %s249_s26, 896  }
  0x70   : > { %501 = vsyncadd (%p355_p8), %s249_s26, 4294966400  ;;  %p19_p12 = scmp.ge.s32.totalorder %s561_s15, 4   ;;  %s722_s9 = smov %s508_s10 }
  0x71   : > { %s723_s10 = smov %s512_s11  ;;  %s724_s11 = smov %s573_s18 }
  0x72   : > { %s725_s12 = smov %s561_s15  ;;  %21 = sbr.rel (!%p19_p12) target bundleno = 7 (0x7), region = 86 }
  0x77   :  { %254 = vsyncpa [#allocation3], 1 }
  0x78   :  { %256 = vsyncpa [#allocation3 + $0x1], 1 }
  0x79   :  { %257 = vsyncpa [#allocation4], 1 }
  0x7a   :  { %259 = vsyncpa [#allocation4 + $0x1], 1 }
  0x7b   :  { %260 = vsyncpa [#allocation7], 1 }
  0x7c   :  { %262 = vsyncpa [#allocation7 + $0x1], 1 }

</bundles_post_ra>
